<compile_context>
chip_gen: v7x
topology: tpu7x:2x2x1
jax: 0.10.0
libtpu: 0.0.40
codegen_flags: <defaults>
</compile_context>

<pallas_src>
import jax
import jax.numpy as jnp
from jax.experimental import pallas as pl
from jax.experimental.pallas import tpu as pltpu


# ----------------------------- Pallas kernel ---------------------------------
def attention_kernel(hid_ref, enc_ref, wah_ref, wae_ref, ba_ref, va_ref, out_ref):
    # hid_ref : [Gc, B, H]   decoder hidden states (bf16), Gc = hypotheses in this chunk
    # enc_ref : [B, S, 2H]   encoder outputs, batch-major (bf16)
    # wah_ref : [H, H]       nn_attn weight, hidden slice, pre-transposed (bf16)
    # wae_ref : [2H, H]      nn_attn weight, encoder slice, pre-transposed (bf16)
    # ba_ref  : [1, H]       nn_attn bias (f32)
    # va_ref  : [1, H]       nn_v weight, bias-free (f32)
    # out_ref : [Gc, B, 2H]  weighted context (f32)
    Gc, B, H = hid_ref.shape
    S = enc_ref.shape[1]
    C = enc_ref.shape[2]                       # 2H

    hid = hid_ref[...]                         # bf16
    enc = enc_ref[...]                         # bf16

    # ---- energy: hidden projection once per (g,b) row, encoder projection as ONE
    #      [B*S, 2H] x [2H, H] bf16 matmul with f32 accumulation (no concat). ----
    proj_h = jnp.dot(hid.reshape(Gc * B, H), wah_ref[...],
                     preferred_element_type=jnp.float32)                 # [Gc*B, H]
    proj_hb = proj_h + ba_ref[...]             # bias folded once per row (B*S -> B adds)
    # S == 8 (one sublane tile per batch row), so this flatten is layout-preserving.
    proj_e = jnp.dot(enc.reshape(B * S, C), wae_ref[...],
                     preferred_element_type=jnp.float32)                 # [B*S, H]

    energy = jnp.tanh(proj_e.reshape(1, B, S, H)
                      + proj_hb.reshape(Gc, B, 1, H))                    # [Gc,B,S,H] f32

    # ---- scores [Gc, B, S]: contract H (lane axis) with v ----
    scores = jnp.sum(energy * va_ref[...], axis=-1)

    # ---- numerically stable softmax over S (lane axis), exact normalization ----
    scores = scores - jnp.max(scores, axis=-1, keepdims=True)
    e = jnp.exp(scores)
    alpha = e / jnp.sum(e, axis=-1, keepdims=True)                       # [Gc, B, S]

    # ---- weighted context: VPU multiply + sublane (S) reduce; no M=1 matmuls ----
    enc_f32 = enc.astype(jnp.float32)
    weighted = jnp.sum(alpha[..., None] * enc_f32[None], axis=2)         # [Gc, B, 2H]
    out_ref[...] = weighted.astype(out_ref.dtype)


# --------------------------- one-time param prep ------------------------------
def prepare_params(params, mxu_dtype=jnp.bfloat16):
    """One-time weight split/transpose/cast (hoisted out of the hot path)."""
    H = params["b_attn"].shape[0]
    w = params["w_attn"]                              # [H, 3H]  Linear(3H -> H) weight
    # Column order [hidden | encoder_output] matches the concat order in forward().
    return {
        "wa_h": jnp.asarray(w[:, :H].T, mxu_dtype),   # [H, H]   acts on decoder hidden
        "wa_e": jnp.asarray(w[:, H:].T, mxu_dtype),   # [2H, H]  acts on encoder outputs
        "ba":   params["b_attn"][None, :].astype(jnp.float32),   # [1, H]
        "va":   params["v_attn"][None, :].astype(jnp.float32),   # [1, H]
    }


def prepare_encoder_outputs(encoder_outputs, mxu_dtype=jnp.bfloat16):
    """One-time (per source sentence, OUTSIDE the decode loop): batch-major + bf16."""
    return jnp.transpose(encoder_outputs, (1, 0, 2)).astype(mxu_dtype)   # [B, S, 2H]


# ------------------------------- wrapper --------------------------------------
def attention_forward(dec_hidden, enc_bse, prep):
    """dec_hidden: [B, H] or [G, B, H]; enc_bse: [B, S, 2H] (from prepare_encoder_outputs).
    Returns [1, B, 2H] (module-equivalent) or [G, B, 2H] for G batched hypotheses."""
    if dec_hidden.ndim == 2:
        dec_hidden = dec_hidden[None]                 # [1, B, H]
    G, B, H = dec_hidden.shape
    _, S, C = enc_bse.shape

    hid = dec_hidden.astype(prep["wa_h"].dtype)       # bf16 for the MXU

    # Shard the hypothesis axis across TensorCores on v7x (2 TC); neutral on v5e/v6e.
    n_chunks = 2 if (G % 2 == 0 and G >= 2) else 1
    gchunk = G // n_chunks

    ctx = pl.pallas_call(
        attention_kernel,
        out_shape=jax.ShapeDtypeStruct((G, B, C), jnp.float32),
        grid=(n_chunks,),
        in_specs=[
            pl.BlockSpec((gchunk, B, H), lambda g: (g, 0, 0)),   # hid: chunk of G
            pl.BlockSpec((B, S, C),      lambda g: (0, 0, 0)),   # enc: constant block
            pl.BlockSpec((H, H),         lambda g: (0, 0)),      # wa_h
            pl.BlockSpec((C, H),         lambda g: (0, 0)),      # wa_e
            pl.BlockSpec((1, H),         lambda g: (0, 0)),      # ba
            pl.BlockSpec((1, H),         lambda g: (0, 0)),      # va
        ],
        out_specs=pl.BlockSpec((gchunk, B, C), lambda g: (g, 0, 0)),
        compiler_params=pltpu.CompilerParams(
            dimension_semantics=("parallel",)),
    )(hid, enc_bse, prep["wa_h"], prep["wa_e"], prep["ba"], prep["va"])
    return ctx                                        # [G, B, 2H]


# -------------------------- pure-JAX reference ---------------------------------
def attention_reference(dec_hidden, encoder_outputs, params):
    """f32 reference matching the PyTorch module. dec_hidden: [B,H]; enc: [S,B,2H]."""
    S, B, C = encoder_outputs.shape
    H = dec_hidden.shape[1]
    enc = jnp.transpose(encoder_outputs, (1, 0, 2))                       # [B, S, 2H]
    h_rep = jnp.broadcast_to(dec_hidden[:, None, :], (B, S, H))
    energy = jnp.tanh(jnp.concatenate([h_rep, enc], axis=-1) @ params["w_attn"].T
                      + params["b_attn"])                                 # [B, S, H]
    scores = energy @ params["v_attn"]                                    # [B, S]
    alpha = jax.nn.softmax(scores, axis=1)
    weighted = jnp.einsum("bs,bsc->bc", alpha, enc)                       # [B, 2H]
    return weighted[None, :, :]                                           # [1, B, 2H]


# ------------------------------- driver ----------------------------------------
def init_params(key, hid_dim):
    H = hid_dim
    ks = jax.random.split(key, 3)

    def u(k, shape, fan_in):
        bound = 1.0 / jnp.sqrt(jnp.float32(fan_in))
        return jax.random.uniform(k, shape, jnp.float32, -bound, bound)

    return {
        "w_attn": u(ks[0], (H, 3 * H), 3 * H),   # nn_attn: Linear(3H -> H)
        "b_attn": u(ks[1], (H,), 3 * H),
        "v_attn": u(ks[2], (H,), H),             # nn_v:    Linear(H -> 1, bias=False)
    }


if __name__ == "__main__":
    B, S, H, G = 4, 8, 32, 4                     # batch, src_len, hid_dim, hypotheses

    key = jax.random.PRNGKey(0)
    kp, kh, ke = jax.random.split(key, 3)

    params = init_params(kp, H)
    prep = prepare_params(params)

    dec_hidden_steps = jax.random.normal(kh, (G, B, H), jnp.float32)
    encoder_outputs = jax.random.normal(ke, (S, B, 2 * H), jnp.float32)
    enc_bse = prepare_encoder_outputs(encoder_outputs)   # once per source sentence

    # bf16 MXU inputs (per perf review) vs the f32 reference -> relaxed tolerance.
    RTOL = ATOL = 2e-2

    # --- module-equivalent single-step call: [B, H] -> [1, B, 2H] ---
    out1 = attention_forward(dec_hidden_steps[0], enc_bse, prep)
    jax.block_until_ready(out1)
    ref1 = attention_reference(dec_hidden_steps[0], encoder_outputs, params)
    assert out1.shape == (1, B, 2 * H)
    assert jnp.allclose(out1, ref1, rtol=RTOL, atol=ATOL), (
        float(jnp.max(jnp.abs(out1 - ref1))))

    # --- G hypotheses batched into one call: [G, B, H] -> [G, B, 2H] ---
    outG = attention_forward(dec_hidden_steps, enc_bse, prep)
    jax.block_until_ready(outG)
    refG = jnp.concatenate(
        [attention_reference(dec_hidden_steps[g], encoder_outputs, params)
         for g in range(G)], axis=0)
    assert outG.shape == (G, B, 2 * H)
    assert jnp.allclose(outG, refG, rtol=RTOL, atol=ATOL), (
        float(jnp.max(jnp.abs(outG - refG))))

    print("KERNEL_OK")
</pallas_src>

<mosaic_0001>
module attributes {stable_mosaic.version = 11 : i64} {
  func.func @attention_kernel(%arg0: i32, %arg1: memref<1x4x32xbf16, #tpu.memory_space<vmem>>, %arg2: memref<4x8x64xbf16, #tpu.memory_space<vmem>>, %arg3: memref<32x32xbf16, #tpu.memory_space<vmem>>, %arg4: memref<64x32xbf16, #tpu.memory_space<vmem>>, %arg5: memref<1x32xf32, #tpu.memory_space<vmem>>, %arg6: memref<1x32xf32, #tpu.memory_space<vmem>>, %arg7: memref<1x4x64xf32, #tpu.memory_space<vmem>>) attributes {dimension_semantics = [#tpu.dimension_semantics<parallel>], iteration_bounds = array<i64: 1>, scalar_prefetch = 0 : i64, scratch_operands = 0 : i64, tpu.core_type = #tpu.core_type<tc>, window_params = [{transform_indices = @transform_0, window_bounds = array<i64: 1, 4, 32>}, {pipeline_mode = #tpu.pipeline_mode<synchronous>, transform_indices = @transform_1, window_bounds = array<i64: 4, 8, 64>}, {pipeline_mode = #tpu.pipeline_mode<synchronous>, transform_indices = @transform_2, window_bounds = array<i64: 32, 32>}, {pipeline_mode = #tpu.pipeline_mode<synchronous>, transform_indices = @transform_3, window_bounds = array<i64: 64, 32>}, {pipeline_mode = #tpu.pipeline_mode<synchronous>, transform_indices = @transform_4, window_bounds = array<i64: 1, 32>}, {pipeline_mode = #tpu.pipeline_mode<synchronous>, transform_indices = @transform_5, window_bounds = array<i64: 1, 32>}, {transform_indices = @transform_6, window_bounds = array<i64: 1, 4, 64>}]} {
    %c0 = arith.constant 0 : index
    %c0_0 = arith.constant 0 : index
    %c0_1 = arith.constant 0 : index
    %0 = vector.load %arg1[%c0, %c0_0, %c0_1] : memref<1x4x32xbf16, #tpu.memory_space<vmem>>, vector<1x4x32xbf16>
    %c0_2 = arith.constant 0 : index
    %c0_3 = arith.constant 0 : index
    %c0_4 = arith.constant 0 : index
    %1 = vector.load %arg2[%c0_2, %c0_3, %c0_4] : memref<4x8x64xbf16, #tpu.memory_space<vmem>>, vector<4x8x64xbf16>
    %2 = vector.shape_cast %0 : vector<1x4x32xbf16> to vector<4x32xbf16>
    %c0_5 = arith.constant 0 : index
    %c0_6 = arith.constant 0 : index
    %3 = vector.load %arg3[%c0_5, %c0_6] : memref<32x32xbf16, #tpu.memory_space<vmem>>, vector<32x32xbf16>
    %cst = arith.constant dense<0.000000e+00> : vector<4x32xf32>
    %4 = tpu.matmul %2, %3, %cst {dimension_numbers = #tpu.dot_dimension_numbers<[1], [0], [0], [1], [0, 0, 1, 1], [], []>} : vector<4x32xbf16>, vector<32x32xbf16>, vector<4x32xf32> -> vector<4x32xf32>
    %c0_7 = arith.constant 0 : index
    %c0_8 = arith.constant 0 : index
    %5 = vector.load %arg5[%c0_7, %c0_8] : memref<1x32xf32, #tpu.memory_space<vmem>>, vector<1x32xf32>
    %6 = vector.broadcast %5 : vector<1x32xf32> to vector<4x32xf32>
    %7 = arith.addf %4, %6 : vector<4x32xf32>
    %8 = vector.shape_cast %1 : vector<4x8x64xbf16> to vector<32x64xbf16>
    %c0_9 = arith.constant 0 : index
    %c0_10 = arith.constant 0 : index
    %9 = vector.load %arg4[%c0_9, %c0_10] : memref<64x32xbf16, #tpu.memory_space<vmem>>, vector<64x32xbf16>
    %cst_11 = arith.constant dense<0.000000e+00> : vector<32x32xf32>
    %10 = tpu.matmul %8, %9, %cst_11 {dimension_numbers = #tpu.dot_dimension_numbers<[1], [0], [0], [1], [0, 0, 1, 1], [], []>} : vector<32x64xbf16>, vector<64x32xbf16>, vector<32x32xf32> -> vector<32x32xf32>
    %11 = vector.shape_cast %10 : vector<32x32xf32> to vector<1x4x8x32xf32>
    %12 = vector.shape_cast %7 : vector<4x32xf32> to vector<1x4x1x32xf32>
    %13 = vector.broadcast %12 : vector<1x4x1x32xf32> to vector<1x4x8x32xf32>
    %14 = arith.addf %11, %13 : vector<1x4x8x32xf32>
    %15 = math.tanh %14 : vector<1x4x8x32xf32>
    %c0_12 = arith.constant 0 : index
    %c0_13 = arith.constant 0 : index
    %16 = vector.load %arg6[%c0_12, %c0_13] : memref<1x32xf32, #tpu.memory_space<vmem>>, vector<1x32xf32>
    %17 = vector.shape_cast %16 : vector<1x32xf32> to vector<1x1x1x32xf32>
    %18 = vector.broadcast %17 : vector<1x1x1x32xf32> to vector<1x4x8x32xf32>
    %19 = arith.mulf %15, %18 : vector<1x4x8x32xf32>
    %cst_14 = arith.constant dense<0.000000e+00> : vector<1x4x8xf32>
    %20 = vector.multi_reduction <add>, %19, %cst_14 [3] : vector<1x4x8x32xf32> to vector<1x4x8xf32>
    %cst_15 = arith.constant dense<0xFF800000> : vector<1x4xf32>
    %21 = vector.multi_reduction <maximumf>, %20, %cst_15 [2] : vector<1x4x8xf32> to vector<1x4xf32>
    %22 = vector.shape_cast %21 : vector<1x4xf32> to vector<1x4x1xf32>
    %23 = vector.broadcast %22 : vector<1x4x1xf32> to vector<1x4x8xf32>
    %24 = arith.subf %20, %23 : vector<1x4x8xf32>
    %25 = math.exp %24 : vector<1x4x8xf32>
    %cst_16 = arith.constant dense<0.000000e+00> : vector<1x4xf32>
    %26 = vector.multi_reduction <add>, %25, %cst_16 [2] : vector<1x4x8xf32> to vector<1x4xf32>
    %27 = vector.shape_cast %26 : vector<1x4xf32> to vector<1x4x1xf32>
    %28 = vector.broadcast %27 : vector<1x4x1xf32> to vector<1x4x8xf32>
    %29 = arith.divf %25, %28 : vector<1x4x8xf32>
    %30 = arith.extf %1 : vector<4x8x64xbf16> to vector<4x8x64xf32>
    %31 = vector.shape_cast %29 : vector<1x4x8xf32> to vector<1x4x8x1xf32>
    %32 = vector.shape_cast %30 : vector<4x8x64xf32> to vector<1x4x8x64xf32>
    %33 = vector.broadcast %31 : vector<1x4x8x1xf32> to vector<1x4x8x64xf32>
    %34 = arith.mulf %33, %32 : vector<1x4x8x64xf32>
    %cst_17 = arith.constant dense<0.000000e+00> : vector<1x4x64xf32>
    %35 = vector.multi_reduction <add>, %34, %cst_17 [2] : vector<1x4x8x64xf32> to vector<1x4x64xf32>
    %c0_18 = arith.constant 0 : index
    %c0_19 = arith.constant 0 : index
    %c0_20 = arith.constant 0 : index
    %36 = vector.load %arg7[%c0_18, %c0_19, %c0_20] : memref<1x4x64xf32, #tpu.memory_space<vmem>>, vector<1x4x64xf32>
    tpu.vector_store %arg7[%c0_18, %c0_19, %c0_20], %35 {strides = array<i32>} : memref<1x4x64xf32, #tpu.memory_space<vmem>>, vector<1x4x64xf32>,
    return
  }
  func.func @transform_0(%arg0: i32) -> (i32, i32, i32) {
    %c0_i32 = arith.constant 0 : i32
    %c0_i32_0 = arith.constant 0 : i32
    %c0_i32_1 = arith.constant 0 : i32
    return %arg0, %c0_i32, %c0_i32_0 : i32, i32, i32
  }
  func.func @transform_1(%arg0: i32) -> (i32, i32, i32) {
    %c0_i32 = arith.constant 0 : i32
    %c0_i32_0 = arith.constant 0 : i32
    %c0_i32_1 = arith.constant 0 : i32
    %c0_i32_2 = arith.constant 0 : i32
    return %c0_i32, %c0_i32_0, %c0_i32_1 : i32, i32, i32
  }
  func.func @transform_2(%arg0: i32) -> (i32, i32) {
    %c0_i32 = arith.constant 0 : i32
    %c0_i32_0 = arith.constant 0 : i32
    %c0_i32_1 = arith.constant 0 : i32
    return %c0_i32, %c0_i32_0 : i32, i32
  }
  func.func @transform_3(%arg0: i32) -> (i32, i32) {
    %c0_i32 = arith.constant 0 : i32
    %c0_i32_0 = arith.constant 0 : i32
    %c0_i32_1 = arith.constant 0 : i32
    return %c0_i32, %c0_i32_0 : i32, i32
  }
  func.func @transform_4(%arg0: i32) -> (i32, i32) {
    %c0_i32 = arith.constant 0 : i32
    %c0_i32_0 = arith.constant 0 : i32
    %c0_i32_1 = arith.constant 0 : i32
    return %c0_i32, %c0_i32_0 : i32, i32
  }
  func.func @transform_5(%arg0: i32) -> (i32, i32) {
    %c0_i32 = arith.constant 0 : i32
    %c0_i32_0 = arith.constant 0 : i32
    %c0_i32_1 = arith.constant 0 : i32
    return %c0_i32, %c0_i32_0 : i32, i32
  }
  func.func @transform_6(%arg0: i32) -> (i32, i32, i32) {
    %c0_i32 = arith.constant 0 : i32
    %c0_i32_0 = arith.constant 0 : i32
    %c0_i32_1 = arith.constant 0 : i32
    return %arg0, %c0_i32, %c0_i32_0 : i32, i32, i32
  }
}

</mosaic_0001>

<bundles_post_ra>
// kernel: tpu_custom_call.1
= control target key start
LH: loop header
LB: loop body
LE: loop exit
PB: predicated region body
PF: predicated region fallthrough
CT: control target
= control target key end

     0   :  { %v592_v1 = vmov 0.0   ;;  %vm593_vm0 = vmmov 0   ;;  %vm53_vm1 = vcmask 261120   ;;  %vm139_vm2 = vcmask 523264   ;;  %s725_s0 = inlined_call_operand.vmem [shape: bf16[1,4,32], index: 0, kind: input, shape index: {}]   ;;  %s726_s1 = inlined_call_operand.vmem [shape: bf16[4,8,64], index: 1, kind: input, shape index: {}]   ;;  %s727_s2 = inlined_call_operand.vmem [shape: bf16[32,32], index: 2, kind: input, shape index: {}]   ;;  %s728_s3 = inlined_call_operand.vmem [shape: bf16[64,32], index: 3, kind: input, shape index: {}]   ;;  %s729_s4 = inlined_call_operand.vmem [shape: f32[1,32], index: 4, kind: input, shape index: {}]   ;;  %s730_s5 = inlined_call_operand.vmem [shape: f32[1,32], index: 5, kind: input, shape index: {}]   ;;  %s731_s6 = inlined_call_operand.hbm [shape: f32[1,4,64], index: 6, kind: output, shape index: {}]  }
   0x1   :  { %v534_v0 = vld [vmem:[%s727_s2] sm:$0xff]   ;;  %507 = vmatprep.subr.bf16.mxu0 %v592_v1  ;;  %v536_v3 = vld [vmem:[%s727_s2 + $0x8] sm:$0xff]   ;;  %511 = vmatprep.mubr.msk.bf16.mxu0 %vm593_vm0, %v592_v1  ;;  %v538_v5 = vld [vmem:[%s728_s3 + $0x10] sm:$0xff]  }
   0x2   :  { %v535_v2 = vld [vmem:[%s728_s3] sm:$0xff]   ;;  %508 = vmatpush3.bf16.msra.mxu0 %v534_v0  ;;  %v537_v4 = vld [vmem:[%s728_s3 + $0x8] sm:$0xff]  }
   0x3   :  { %515 = vmatprep.subr.bf16.mxu1 %v535_v2  ;;  %509 = vmatprep.subr.bf16.mxu0 %v592_v1  ;;  %v25_v6 = vld [vmem:[%s725_s0] sm:$0x3] }
   0x4   :  { %516 = vmatpush3.bf16.msra.mxu1 %v535_v2  ;;  %v653_v7 = vld [vmem:[%s726_s1] sm:$0xff]  }
   0x5   :  { %517 = vmatprep.subr.bf16.mxu1 %v537_v4 }
   0x6   :  { %510 = vmatpush3.bf16.msra.mxu0 %v536_v3 }
   0x7   :  { %11 = vsyncpa [#allocation3], 0  ;;  %v539_v8 = vld [vmem:[%s728_s3 + $0x18] sm:$0xff]   ;;  %523 = vmatprep.mubr.msk.bf16.mxu1 %vm139_vm2, %v653_v7  ;;  %v664_v9 = vld [vmem:[%s726_s1 + $0x8] sm:$0xff]   ;;  %v594_v10 = vmov 1966171168   ;;  %v199_v12 = vlaneseq }
   0x8   :  { %518 = vmatpush3.bf16.msra.mxu1 %v537_v4  ;;  %v197_v11 = vunpack.c.l.s4 %v594_v10  ;;  %v485_v15 = vld [vmem:[%s729_s4] ss:$0 sm:$0xff]  ;;  %vm293_vm3 = vcmask 1041409   ;;  %vm295_vm4 = vcmask 1042434   ;;  %vm297_vm5 = vcmask 1043459  }
   0x9   :  { %512 = vmatmul.mubr.msk.bf16.vlgmr.msra.gmra.mrb[0].mxu0 %vm53_vm1, %v25_v6  ;;  %519 = vmatprep.subr.bf16.mxu1 %v538_v5  ;;  %v668_v14 = vshrl.u32 %v199_v12, 7  ;;  %v497_v41 = vld [vmem:[%s730_s5] ss:$0 sm:$0xff]  ;;  %v276_v54 = vand.u32 127, %v199_v12  ;;  %vm300_vm6 = vcmask 60416   ;;  %v595_v4 = vmov 0  }
   0xa   :  { %v198_v13 = vunpack.c.0.s8 %v197_v11  ;;  %533 = vset.pattern.permute.xlu0 %v595_v4  ;;  %532 = vset.pattern.permute.xlu1 %v595_v4  ;;  %s596_s5 = smov [#allocation2]   ;;  %vm469_vm7 = vcmask 519168  }
   0xb   :  { %v675_v23 = vsub.s32 0, %v668_v14  ;;  %v279_v57 = vsub.s32 %v276_v54, %v668_v14  ;;  %v315_v6 = vsub.s32 2, %v668_v14  ;;  %s477_s14 = sshll.u32 %s596_s5, 4  ;;  %s478_s14 = int_to_ptr.vmem [resolvable:$true] %s477_s14 }
   0xc   :  { %520 = vmatpush3.bf16.msra.mxu1 %v538_v5  ;;  %v201_v16 = vsub.s32 %v198_v13, %v668_v14  ;;  %v311_v5 = vsub.s32 1, %v668_v14  ;;  %s568_s15 = scalar_lea.vmem %s478_s14, 64  ;;  %p573_p1 = scmp.lt.s32.totalorder %s478_s14, %s478_s14 }
   0xd   :  { %521 = vmatprep.subr.bf16.mxu1 %v539_v8  ;;  %p569_p0 = scmp.ne.s32.totalorder %s478_s14, %s568_s15  ;;  %p574_p2 = scmp.lt.s32.totalorder %s568_s15, %s568_s15 }
   0xf   :  { %p575_p3 = por %p574_p2, %p573_p1 }
  0x10   :  { %522 = vmatpush3.bf16.msra.mxu1 %v539_v8  ;;  %v319_v8 = vsub.s32 3, %v668_v14 }
  0x11   :  { %p576_p4 = pnand %p575_p3, %p569_p0 }
  0x13   :  { %524 = vmatmul.mubr.msk.bf16.vlgmr.msra.gmra.mrb[0].mxu1 %vm139_vm2, %v664_v9 }
  0xdc   :  { %v91_v17 = vpop.f32.mrb[0].mxu0 }
  0xdd   :  { %v92_v18 = vadd.f32 %v485_v15, %v91_v17  ;;  %v513_v19 = vpop.f32.mrb[1].mxu0 }
  0xde   :  { %v94_v20 = vpop.f32.mrb[2].mxu0 }
  0xdf   :  { %v202_v21 = vrot.slane %v92_v18, %v201_v16  ;;  %v514_v22 = vpop.f32.mrb[3].mxu0 }
  0xe1   :  { %v203_v24 = vcombine.high %v202_v21, %v202_v21  ;;  %v210_v25 = vrot.slane %v202_v21, %v201_v16 }
  0xe3   :  { %v218_v26 = vcombine.high %v210_v25, %v210_v25  ;;  %v217_v27 = vrot.slane %v203_v24, %v201_v16  ;;  %v223_v28 = vrot.slane %v210_v25, %v675_v23 }
  0xe5   :  { %v231_v29 = vrot.slane %v218_v26, %v675_v23  ;;  %v219_v30 = vcombine.high %v217_v27, %v217_v27  ;;  %v227_v32 = vrot.slane %v217_v27, %v675_v23 }
  0xe6   :  { %v525_v31 = vpop.f32.mrb[0].mxu1 }
  0xe7   :  { %v242_v33 = vadd.f32 %v525_v31, %v231_v29  ;;  %v180_v34 = vpop.f32.mrb[1].mxu1  ;;  %v235_v35 = vrot.slane %v219_v30, %v675_v23 }
  0xe8   :  { %v240_v36 = vadd.f32 %v223_v28, %v180_v34  ;;  %v526_v37 = vpop.f32.mrb[2].mxu1 }
  0xe9   :  { %544 = vtanh.f32 %v242_v33  ;;  %v243_v38 = vadd.f32 %v526_v37, %v235_v35  ;;  %v183_v39 = vpop.f32.mrb[3].mxu1 }
  0xea   :  { %546 = vtanh.f32 %v240_v36  ;;  %v241_v40 = vadd.f32 %v227_v32, %v183_v39 }
  0xeb   :  { %548 = vtanh.f32 %v243_v38 }
  0xec   :  { %550 = vtanh.f32 %v241_v40 }
  0xf3   :  { %v545_v42 = vpop.eup %544 }
  0xf4   :  { %v547_v43 = vpop.eup %546  ;;  %v257_v44 = vmul.f32 %v545_v42, %v497_v41 }
  0xf5   :  { %v549_v45 = vpop.eup %548  ;;  %v255_v46 = vmul.f32 %v547_v43, %v497_v41 }
  0xf6   :  { %v551_v47 = vpop.eup %550  ;;  %v265_v48 = vsel %vm53_vm1, %v257_v44, 0.0  ;;  %v258_v49 = vmul.f32 %v549_v45, %v497_v41 }
  0xf7   :  { %v259_v50 = vsel %vm53_vm1, %v255_v46, 0.0  ;;  %266 = vadd.xlane.f32.xlu1 %v265_v48  ;;  %v256_v51 = vmul.f32 %v551_v47, %v497_v41 }
  0xf8   :  { %260 = vadd.xlane.f32.xlu0 %v259_v50  ;;  %v268_v52 = vsel %vm53_vm1, %v258_v49, 0.0 }
  0xf9   :  { %v262_v53 = vsel %vm53_vm1, %v256_v51, 0.0 }
  0xfb   :  { %269 = vadd.xlane.f32.xlu1 %v268_v52 }
  0xfc   :  { %263 = vadd.xlane.f32.xlu0 %v262_v53 }
 0x184   :  { %v267_v55 = vpop.xlane.xlu1 %266 }
 0x185   :  { %v261_v56 = vpop.xlane.xlu0 %260  ;;  %v288_v62 = vrot.slane %v267_v55, %v279_v57 }
 0x186   :  { %v280_v60 = vrot.slane %v261_v56, %v279_v57 }
 0x188   :  { %v270_v59 = vpop.xlane.xlu1 %269 }
 0x189   :  { %v264_v58 = vpop.xlane.xlu0 %263  ;;  %v292_v63 = vrot.slane %v270_v59, %v279_v57 }
 0x18a   :  { %v284_v61 = vrot.slane %v264_v58, %v279_v57 }
 0x18c   :  { %v294_v0 = vsel %vm293_vm3, %v284_v61, %v280_v60  ;;  %v407_v60 = vunpack.c.l.bf16 %v664_v9 }
 0x18d   :  { %v296_v1 = vsel %vm295_vm4, %v288_v62, %v294_v0 }
 0x18e   :  { %v298_v2 = vsel %vm297_vm5, %v292_v63, %v296_v1 }
 0x18f   :  { %v301_v3 = vsel %vm300_vm6, %v298_v2, -inf  ;;  %v408_v2 = vunpack.c.h.bf16 %v664_v9 }
 0x190   :  { %302 = vmax.xlane.f32.xlu0 %v301_v3 }
 0x21d   :  { %v303_v10 = vpop.xlane.xlu0 %302 }
 0x21e   :  { %v308_v11 = vrot.slane %v303_v10, %v675_v23  ;;  %v312_v12 = vrot.slane %v303_v10, %v311_v5  ;;  %v316_v13 = vrot.slane %v303_v10, %v315_v6  ;;  %v320_v15 = vrot.slane %v303_v10, %v319_v8 }
 0x220   :  { %v325_v16 = vsub.f32 %v261_v56, %v308_v11  ;;  %v326_v17 = vsub.f32 %v264_v58, %v312_v12  ;;  %v327_v18 = vsub.f32 %v267_v55, %v316_v13  ;;  %v328_v21 = vsub.f32 %v270_v59, %v320_v15 }
 0x221   :  { %v406_v55 = vunpack.c.h.bf16 %v653_v7 }
 0x222   :  { %v329_v19 = vmul.f32 1.442695, %v325_v16  ;;  %v331_v20 = vmul.f32 1.442695, %v326_v17  ;;  %v333_v22 = vmul.f32 1.442695, %v327_v18 }
 0x223   :  { %v335_v24 = vmul.f32 1.442695, %v328_v21 }
 0x224   :  { %552 = vpow2.f32 %v329_v19 }
 0x225   :  { %554 = vpow2.f32 %v331_v20 }
 0x226   :  { %556 = vpow2.f32 %v333_v22 }
 0x227   :  { %558 = vpow2.f32 %v335_v24 }
 0x22e   :  { %v553_v25 = vpop.eup %552 }
 0x22f   :  { %v555_v14 = vpop.eup %554  ;;  %342 = vperm.xlu1 %532, %v553_v25  }
 0x230   :  { %345 = vperm.xlu0 %533, %v555_v14   ;;  %v557_v26 = vpop.eup %556 }
 0x231   :  { %v559_v27 = vpop.eup %558 }
 0x233   :  { %348 = vperm.xlu1 %532, %v557_v26  }
 0x237   :  { %351 = vperm.xlu1 %532, %v559_v27  }
 0x2ae   :  { %v343_v28 = vpop.permute.xlu1 %342 }
 0x2af   :  { %v346_v29 = vpop.permute.xlu0 %345  ;;  %v356_v32 = vrot.slane %v343_v28, %v279_v57 }
 0x2b0   :  { %v360_v31 = vrot.slane %v346_v29, %v279_v57 }
 0x2b2   :  { %v349_v30 = vpop.permute.xlu1 %348  ;;  %v369_v35 = vsel %vm293_vm3, %v360_v31, %v356_v32 }
 0x2b3   :  { %v364_v33 = vrot.slane %v349_v30, %v279_v57 }
 0x2b5   :  { %v370_v37 = vsel %vm295_vm4, %v364_v33, %v369_v35 }
 0x2b6   :  { %v352_v34 = vpop.permute.xlu1 %351 }
 0x2b7   :  { %v368_v36 = vrot.slane %v352_v34, %v279_v57 }
 0x2b9   :  { %v371_v38 = vsel %vm297_vm5, %v368_v36, %v370_v37 }
 0x2ba   :  { %v373_v39 = vsel %vm300_vm6, %v371_v38, 0.0 }
 0x2bb   :  { %374 = vadd.xlane.f32.xlu1 %v373_v39 }
 0x348   :  { %v375_v40 = vpop.xlane.xlu1 %374 }
 0x349   :  { %v380_v41 = vrot.slane %v375_v40, %v675_v23  ;;  %v384_v42 = vrot.slane %v375_v40, %v311_v5  ;;  %v388_v43 = vrot.slane %v375_v40, %v315_v6  ;;  %v392_v44 = vrot.slane %v375_v40, %v319_v8 }
 0x34a   :  { %v405_v23 = vunpack.c.l.bf16 %v653_v7 }
 0x34b   :  { %560 = vrcp.f32 %v380_v41 }
 0x34c   :  { %562 = vrcp.f32 %v384_v42 }
 0x34d   :  { %564 = vrcp.f32 %v388_v43 }
 0x34e   :  { %566 = vrcp.f32 %v392_v44 }
 0x355   :  { %v561_v45 = vpop.eup %560 }
 0x356   :  { %v398_v46 = vmul.f32 %v561_v45, %v553_v25  ;;  %v563_v47 = vpop.eup %562 }
 0x357   :  { %v400_v48 = vmul.f32 %v563_v47, %v555_v14  ;;  %v565_v49 = vpop.eup %564 }
 0x358   :  { %411 = vperm.xlu0 %533, %v398_v46   ;;  %v402_v50 = vmul.f32 %v565_v49, %v557_v26  ;;  %v567_v51 = vpop.eup %566 }
 0x359   :  { %v404_v52 = vmul.f32 %v567_v51, %v559_v27 }
 0x35c   :  { %416 = vperm.xlu0 %533, %v400_v48  }
 0x360   :  { %421 = vperm.xlu0 %533, %v402_v50  }
 0x364   :  { %426 = vperm.xlu0 %533, %v404_v52  }
 0x3d7   :  { %v412_v53 = vpop.permute.xlu0 %411 }
 0x3d8   :  { %v429_v54 = vmul.f32 %v412_v53, %v405_v23 }
 0x3da   :  { %v433_v56 = vsel %vm139_vm2, %v429_v54, 0.0 }
 0x3db   :  { %v434_v57 = vrot.slane %v433_v56, 4  ;;  %v417_v58 = vpop.permute.xlu0 %416 }
 0x3dc   :  { %v430_v59 = vmul.f32 %v417_v58, %v406_v55 }
 0x3dd   :  { %v435_v62 = vadd.f32 %v434_v57, %v433_v56 }
 0x3de   :  { %v440_v61 = vsel %vm139_vm2, %v430_v59, 0.0 }
 0x3df   :  { %v441_v63 = vrot.slane %v440_v61, 4  ;;  %v422_v0 = vpop.permute.xlu0 %421  ;;  %v436_v5 = vrot.slane %v435_v62, 2 }
 0x3e0   :  { %v431_v1 = vmul.f32 %v422_v0, %v407_v60 }
 0x3e1   :  { %v442_v3 = vadd.f32 %v441_v63, %v440_v61  ;;  %v437_v15 = vadd.f32 %v436_v5, %v435_v62 }
 0x3e2   :  { %v447_v4 = vsel %vm139_vm2, %v431_v1, 0.0 }
 0x3e3   :  { %v443_v7 = vrot.slane %v442_v3, 2  ;;  %v448_v6 = vrot.slane %v447_v4, 4  ;;  %v427_v8 = vpop.permute.xlu0 %426  ;;  %v438_v21 = vrot.slane %v437_v15, 1 }
 0x3e4   :  { %v432_v10 = vmul.f32 %v427_v8, %v408_v2 }
 0x3e5   :  { %v444_v11 = vadd.f32 %v443_v7, %v442_v3  ;;  %v449_v12 = vadd.f32 %v448_v6, %v447_v4  ;;  %v439_v26 = vadd.f32 %v438_v21, %v437_v15 }
 0x3e6   :  { %v454_v13 = vsel %vm139_vm2, %v432_v10, 0.0 }
 0x3e7   :  { %v450_v16 = vrot.slane %v449_v12, 2  ;;  %v455_v17 = vrot.slane %v454_v13, 4  ;;  %v445_v18 = vrot.slane %v444_v11, 1 }
 0x3e9   :  { %v451_v19 = vadd.f32 %v450_v16, %v449_v12  ;;  %v456_v20 = vadd.f32 %v455_v17, %v454_v13  ;;  %v446_v24 = vadd.f32 %v445_v18, %v444_v11 }
 0x3eb   :  { %v452_v9 = vrot.slane %v451_v19, 1  ;;  %v457_v22 = vrot.slane %v456_v20, 2  ;;  %v465_v29 = vsel %vm293_vm3, %v446_v24, %v439_v26 }
 0x3ed   :  { %v458_v25 = vadd.f32 %v457_v22, %v456_v20  ;;  %v453_v14 = vadd.f32 %v452_v9, %v451_v19 }
 0x3ef   :  { %v459_v27 = vrot.slane %v458_v25, 1  ;;  %v466_v30 = vsel %vm295_vm4, %v453_v14, %v465_v29 }
 0x3f1   :  { %v460_v28 = vadd.f32 %v459_v27, %v458_v25 }
 0x3f3   :  { %v467_v31 = vsel %vm297_vm5, %v460_v28, %v466_v30 }
 0x3f4   :  { %470 = vst.msk [vmem:[#allocation2] sm:$0xf] %vm469_vm7, %v467_v31 }
 0x3f5   :  { %579 = shalt.err (!%p576_p4)
}
 0x3f6   :  { %s580_s18 = scalar_lea.hbm %s731_s6, 64 }
 0x3f7   :  { %p581_p5 = scmp.ne.s32.totalorder %s731_s6, %s580_s18  ;;  %p584_p6 = scmp.lt.u32.totalorder %s580_s18, %s731_s6 }
 0x3f9   :  { %p586_p7 = pnand %p584_p6, %p581_p5 }
 0x3fb   :  { %589 = shalt.err (!%p586_p7)
}
 0x3fc   :  { %480 = dma.vmem_to_hbm [thread:$0]  %s478_s14, 64, %s731_s6, [#allocation3]  }
 0x3fd   :  { %590 = dma.done.wait [#allocation3], 64  }
 0x3fe   :  { %591 = vsyncadd [#allocation3], 4294967232 }
 0x3ff   :  { %484 = vsyncpa [#allocation3], 1 }

</bundles_post_ra>
